<compile_context>
chip_gen: v7x
topology: tpu7x:2x2x1
jax: 0.10.0
libtpu: 0.0.40
codegen_flags: <defaults>
</compile_context>

<pallas_src>
import functools

import jax
import jax.numpy as jnp
from jax.experimental import pallas as pl
from jax.experimental.pallas import tpu as pltpu


def _wavenet_layer_kernel(xs_ref, w1_ref, b1_ref, w2_ref, b2_ref,
                          res_ref, skip_ref, *, c_in):
    """Single grid step over the whole (lane-dense) problem.

    xs_ref   : (R, L)      stacked shifted views of x; rows [0, c_in) equal x.
                           L = B*T (batch collapsed into the lane axis).
    w1_ref   : (C_out, R)  fused dilated-conv weight (all K taps side by side).
    b1_ref   : (C_out, 1)
    w2_ref   : (C_out, 1)  1x1-conv weight as a column.
    b2_ref   : (1, 1)
    res_ref  : (C_in, L)   x + skip (skip broadcast over channels).
    skip_ref : (1, L)      skip connection.
    """
    xs = xs_ref[...]

    # Dilated Conv1d over all K taps as ONE MXU matmul: (C_out, R) @ (R, L).
    acc = jnp.dot(w1_ref[...], xs, preferred_element_type=jnp.float32)
    acc = acc + b1_ref[...]                               # (C_out, L)

    # Gated activation with a single EUP transcendental:
    #   tanh(a) * sigmoid(a) == (1 - t) / (1 + t*t),  t = exp(-a)
    # clip keeps t*t finite in f32 (saturated values remain exact).
    # pl.reciprocal(..., approx=True) would ride the EUP vrcp slot if a ~1e-4
    # gate deviation is acceptable; default (refined) reciprocal keeps the
    # forward numerics bit-tight while still using only one transcendental.
    t = jnp.exp(-jnp.clip(acc, -30.0, 30.0))
    gated = (1.0 - t) * pl.reciprocal(1.0 + t * t)        # (C_out, L)

    # 1x1 conv down to a single skip channel: a 1-row MXU result is degenerate,
    # so do it as a VPU broadcast-multiply + sublane (XLU) reduction.
    skip = jnp.sum(w2_ref[...] * gated, axis=0, keepdims=True) + b2_ref[...]

    skip_ref[...] = skip.astype(skip_ref.dtype)
    # Residual add: x lives in the first c_in rows of the stacked input
    # (sublane offset 0), so no extra HBM read of x is needed.
    res_ref[...] = (xs[:c_in, :] + skip).astype(res_ref.dtype)


def wavenet_layer(x, w1, b1, w2, b2, *, dilation):
    """x  : (B, C_in, T) f32
    w1 : (C_out, C_in, K)   (PyTorch Conv1d weight layout)
    b1 : (C_out,)
    w2 : (1, C_out, 1)      (PyTorch Conv1d 1x1 weight layout)
    b2 : (1,)
    Returns (x_residual (B, C_in, T), x_skip (B, 1, T))."""
    B, C_in, T = x.shape
    C_out, _, K = w1.shape
    pad = dilation * (K - 1) // 2
    L = B * T

    # ---- glue (plain JAX, outside the kernel) ------------------------------
    xpad = jnp.pad(x, ((0, 0), (0, 0), (pad, pad)))

    # Order taps so the view equal to x sits in the first C_in rows of the
    # stack (odd K -> center tap). Otherwise prepend x with zero weights.
    if pad % dilation == 0 and pad // dilation < K:
        c = pad // dilation
        tap_order = [c] + [k for k in range(K) if k != c]
        views = [xpad[:, :, k * dilation:k * dilation + T] for k in tap_order]
        w_blocks = [w1[:, :, k] for k in tap_order]
    else:
        views = [x] + [xpad[:, :, k * dilation:k * dilation + T] for k in range(K)]
        w_blocks = [jnp.zeros((C_out, C_in), x.dtype)] + [w1[:, :, k] for k in range(K)]

    # (B, R0, T) -> (R0, B*T): channels/taps on sublanes, batch*time on lanes.
    stack = jnp.concatenate(views, axis=1).transpose(1, 0, 2).reshape(-1, L)
    R0 = stack.shape[0]
    R = ((R0 + 7) // 8) * 8                 # pad contraction dim to f32 sublane tile
    stack = jnp.pad(stack, ((0, R - R0), (0, 0)))

    w1f = jnp.pad(jnp.concatenate(w_blocks, axis=1), ((0, 0), (0, R - R0)))  # (C_out, R)
    b1c = b1.reshape(C_out, 1)
    w2c = w2.reshape(C_out, 1)
    b2c = b2.reshape(1, 1)

    kern = functools.partial(_wavenet_layer_kernel, c_in=C_in)

    flops = 2 * C_out * R * L + 10 * C_out * L + 2 * C_in * L + 2 * L
    bytes_accessed = 4 * (R * L + C_out * R + 2 * C_out + 1 + C_in * L + L)

    res, skip = pl.pallas_call(
        kern,
        out_shape=(jax.ShapeDtypeStruct((C_in, L), x.dtype),
                   jax.ShapeDtypeStruct((1, L), x.dtype)),
        grid_spec=pltpu.PrefetchScalarGridSpec(
            num_scalar_prefetch=0,
            grid=(1,),                       # one lane-dense step over L = B*T lanes
            in_specs=[
                pl.BlockSpec((R, L), lambda i: (0, 0)),        # stacked shifted views
                pl.BlockSpec((C_out, R), lambda i: (0, 0)),    # fused conv1 weight
                pl.BlockSpec((C_out, 1), lambda i: (0, 0)),    # b1
                pl.BlockSpec((C_out, 1), lambda i: (0, 0)),    # w2 column
                pl.BlockSpec((1, 1), lambda i: (0, 0)),        # b2
            ],
            out_specs=[
                pl.BlockSpec((C_in, L), lambda i: (0, 0)),     # residual
                pl.BlockSpec((1, L), lambda i: (0, 0)),        # skip
            ],
        ),
        compiler_params=pltpu.CompilerParams(
            dimension_semantics=("arbitrary",)),
        cost_estimate=pl.CostEstimate(
            flops=flops,
            transcendentals=C_out * L,
            bytes_accessed=bytes_accessed),
    )(stack, w1f, b1c, w2c, b2c)

    # Back to the PyTorch NCW layout.
    x_res = res.reshape(C_in, B, T).transpose(1, 0, 2)     # (B, C_in, T)
    x_skip = skip.reshape(B, T)[:, None, :]                # (B, 1, T)
    return x_res, x_skip


if __name__ == "__main__":
    # Small shapes consistent with the module: batch=2, in_channels=4,
    # out_channels=8, seq length T=128, kernel_size=3, dilation=2.
    B, C_in, C_out, T = 2, 4, 8, 128
    K, dilation = 3, 2

    key = jax.random.PRNGKey(0)
    k1, k2, k3, k4, k5 = jax.random.split(key, 5)
    x = jax.random.normal(k1, (B, C_in, T), jnp.float32)

    # Parameters in the PyTorch Conv1d layouts.
    w1 = jax.random.normal(k2, (C_out, C_in, K), jnp.float32) * 0.1
    b1 = jax.random.normal(k3, (C_out,), jnp.float32) * 0.1
    w2 = jax.random.normal(k4, (1, C_out, 1), jnp.float32) * 0.1
    b2 = jax.random.normal(k5, (1,), jnp.float32) * 0.1

    res, skip = wavenet_layer(x, w1, b1, w2, b2, dilation=dilation)
    jax.block_until_ready((res, skip))

    # Pure-JAX reference of the PyTorch forward.
    pad = dilation * (K - 1) // 2
    xp = jnp.pad(x, ((0, 0), (0, 0), (pad, pad)))
    acc = jnp.zeros((B, C_out, T), jnp.float32)
    for k in range(K):
        acc = acc + jnp.einsum("oc,bct->bot", w1[:, :, k],
                               xp[:, :, k * dilation:k * dilation + T])
    acc = acc + b1[None, :, None]
    gated = jnp.tanh(acc) * jax.nn.sigmoid(acc)
    skip_ref = jnp.einsum("oc,bct->bot", w2[:, :, 0], gated) + b2[None, :, None]
    res_ref = x + skip_ref

    assert res.shape == (B, C_in, T) and skip.shape == (B, 1, T)
    assert jnp.allclose(skip, skip_ref, atol=1e-4, rtol=1e-4)
    assert jnp.allclose(res, res_ref, atol=1e-4, rtol=1e-4)
    print("KERNEL_OK")
</pallas_src>

<mosaic_0001>
module attributes {stable_mosaic.version = 11 : i64} {
  func.func @_wavenet_layer_kernel(%arg0: i32, %arg1: memref<16x256xf32, #tpu.memory_space<vmem>>, %arg2: memref<8x16xf32, #tpu.memory_space<vmem>>, %arg3: memref<8x1xf32, #tpu.memory_space<vmem>>, %arg4: memref<8x1xf32, #tpu.memory_space<vmem>>, %arg5: memref<1x1xf32, #tpu.memory_space<vmem>>, %arg6: memref<4x256xf32, #tpu.memory_space<vmem>>, %arg7: memref<1x256xf32, #tpu.memory_space<vmem>>) attributes {dimension_semantics = [#tpu.dimension_semantics<arbitrary>], iteration_bounds = array<i64: 1>, scalar_prefetch = 0 : i64, scratch_operands = 0 : i64, tpu.core_type = #tpu.core_type<tc>, window_params = [{pipeline_mode = #tpu.pipeline_mode<synchronous>, transform_indices = @transform_0, window_bounds = array<i64: 16, 256>}, {pipeline_mode = #tpu.pipeline_mode<synchronous>, transform_indices = @transform_1, window_bounds = array<i64: 8, 16>}, {pipeline_mode = #tpu.pipeline_mode<synchronous>, transform_indices = @transform_2, window_bounds = array<i64: 8, 1>}, {pipeline_mode = #tpu.pipeline_mode<synchronous>, transform_indices = @transform_3, window_bounds = array<i64: 8, 1>}, {pipeline_mode = #tpu.pipeline_mode<synchronous>, transform_indices = @transform_4, window_bounds = array<i64: 1, 1>}, {pipeline_mode = #tpu.pipeline_mode<synchronous>, transform_indices = @transform_5, window_bounds = array<i64: 4, 256>}, {pipeline_mode = #tpu.pipeline_mode<synchronous>, transform_indices = @transform_6, window_bounds = array<i64: 1, 256>}]} {
    %c0 = arith.constant 0 : index
    %c0_0 = arith.constant 0 : index
    %0 = vector.load %arg1[%c0, %c0_0] : memref<16x256xf32, #tpu.memory_space<vmem>>, vector<16x256xf32>
    %c0_1 = arith.constant 0 : index
    %c0_2 = arith.constant 0 : index
    %1 = vector.load %arg2[%c0_1, %c0_2] : memref<8x16xf32, #tpu.memory_space<vmem>>, vector<8x16xf32>
    %cst = arith.constant dense<0.000000e+00> : vector<8x256xf32>
    %2 = tpu.matmul %1, %0, %cst {dimension_numbers = #tpu.dot_dimension_numbers<[1], [0], [0], [1], [0, 0, 1, 1], [], []>} : vector<8x16xf32>, vector<16x256xf32>, vector<8x256xf32> -> vector<8x256xf32>
    %c0_3 = arith.constant 0 : index
    %c0_4 = arith.constant 0 : index
    %3 = vector.load %arg3[%c0_3, %c0_4] : memref<8x1xf32, #tpu.memory_space<vmem>>, vector<8x1xf32>
    %4 = vector.broadcast %3 : vector<8x1xf32> to vector<8x256xf32>
    %5 = arith.addf %2, %4 : vector<8x256xf32>
    %cst_5 = arith.constant -3.000000e+01 : f32
    %cst_6 = arith.constant 3.000000e+01 : f32
    %6 = vector.broadcast %cst_5 : f32 to vector<8x256xf32>
    %7 = arith.maximumf %6, %5 : vector<8x256xf32>
    %8 = vector.broadcast %cst_6 : f32 to vector<8x256xf32>
    %9 = arith.minimumf %8, %7 : vector<8x256xf32>
    %cst_7 = arith.constant 0.000000e+00 : f32
    %10 = vector.broadcast %cst_7 : f32 to vector<8x256xf32>
    %11 = arith.subf %10, %9 : vector<8x256xf32>
    %12 = math.exp %11 : vector<8x256xf32>
    %cst_8 = arith.constant 1.000000e+00 : f32
    %13 = vector.broadcast %cst_8 : f32 to vector<8x256xf32>
    %14 = arith.subf %13, %12 : vector<8x256xf32>
    %15 = arith.mulf %12, %12 : vector<8x256xf32>
    %cst_9 = arith.constant 1.000000e+00 : f32
    %16 = vector.broadcast %cst_9 : f32 to vector<8x256xf32>
    %17 = arith.addf %16, %15 : vector<8x256xf32>
    %18 = tpu.reciprocal %17 : vector<8x256xf32> -> vector<8x256xf32>
    %19 = arith.mulf %14, %18 : vector<8x256xf32>
    %c0_10 = arith.constant 0 : index
    %c0_11 = arith.constant 0 : index
    %20 = vector.load %arg4[%c0_10, %c0_11] : memref<8x1xf32, #tpu.memory_space<vmem>>, vector<8x1xf32>
    %21 = vector.broadcast %20 : vector<8x1xf32> to vector<8x256xf32>
    %22 = arith.mulf %21, %19 : vector<8x256xf32>
    %cst_12 = arith.constant dense<0.000000e+00> : vector<256xf32>
    %23 = vector.multi_reduction <add>, %22, %cst_12 [0] : vector<8x256xf32> to vector<256xf32>
    %24 = vector.shape_cast %23 : vector<256xf32> to vector<1x256xf32>
    %c0_13 = arith.constant 0 : index
    %c0_14 = arith.constant 0 : index
    %25 = vector.load %arg5[%c0_13, %c0_14] : memref<1x1xf32, #tpu.memory_space<vmem>>, vector<1x1xf32>
    %26 = vector.broadcast %25 : vector<1x1xf32> to vector<1x256xf32>
    %27 = arith.addf %24, %26 : vector<1x256xf32>
    %c0_15 = arith.constant 0 : index
    %c0_16 = arith.constant 0 : index
    %28 = vector.load %arg7[%c0_15, %c0_16] : memref<1x256xf32, #tpu.memory_space<vmem>>, vector<1x256xf32>
    tpu.vector_store %arg7[%c0_15, %c0_16], %27 {strides = array<i32>} : memref<1x256xf32, #tpu.memory_space<vmem>>, vector<1x256xf32>,
    %29 = vector.extract_strided_slice %0 {offsets = [0, 0], sizes = [4, 256], strides = [1, 1]} : vector<16x256xf32> to vector<4x256xf32>
    %30 = vector.broadcast %27 : vector<1x256xf32> to vector<4x256xf32>
    %31 = arith.addf %29, %30 : vector<4x256xf32>
    %c0_17 = arith.constant 0 : index
    %c0_18 = arith.constant 0 : index
    %32 = vector.load %arg6[%c0_17, %c0_18] : memref<4x256xf32, #tpu.memory_space<vmem>>, vector<4x256xf32>
    tpu.vector_store %arg6[%c0_17, %c0_18], %31 {strides = array<i32>} : memref<4x256xf32, #tpu.memory_space<vmem>>, vector<4x256xf32>,
    return
  }
  func.func @transform_0(%arg0: i32) -> (i32, i32) {
    %c0_i32 = arith.constant 0 : i32
    %c0_i32_0 = arith.constant 0 : i32
    %c0_i32_1 = arith.constant 0 : i32
    return %c0_i32, %c0_i32_0 : i32, i32
  }
  func.func @transform_1(%arg0: i32) -> (i32, i32) {
    %c0_i32 = arith.constant 0 : i32
    %c0_i32_0 = arith.constant 0 : i32
    %c0_i32_1 = arith.constant 0 : i32
    return %c0_i32, %c0_i32_0 : i32, i32
  }
  func.func @transform_2(%arg0: i32) -> (i32, i32) {
    %c0_i32 = arith.constant 0 : i32
    %c0_i32_0 = arith.constant 0 : i32
    %c0_i32_1 = arith.constant 0 : i32
    return %c0_i32, %c0_i32_0 : i32, i32
  }
  func.func @transform_3(%arg0: i32) -> (i32, i32) {
    %c0_i32 = arith.constant 0 : i32
    %c0_i32_0 = arith.constant 0 : i32
    %c0_i32_1 = arith.constant 0 : i32
    return %c0_i32, %c0_i32_0 : i32, i32
  }
  func.func @transform_4(%arg0: i32) -> (i32, i32) {
    %c0_i32 = arith.constant 0 : i32
    %c0_i32_0 = arith.constant 0 : i32
    %c0_i32_1 = arith.constant 0 : i32
    return %c0_i32, %c0_i32_0 : i32, i32
  }
  func.func @transform_5(%arg0: i32) -> (i32, i32) {
    %c0_i32 = arith.constant 0 : i32
    %c0_i32_0 = arith.constant 0 : i32
    %c0_i32_1 = arith.constant 0 : i32
    return %c0_i32, %c0_i32_0 : i32, i32
  }
  func.func @transform_6(%arg0: i32) -> (i32, i32) {
    %c0_i32 = arith.constant 0 : i32
    %c0_i32_0 = arith.constant 0 : i32
    %c0_i32_1 = arith.constant 0 : i32
    return %c0_i32, %c0_i32_0 : i32, i32
  }
}

</mosaic_0001>

<bundles_post_ra>
// kernel: tpu_custom_call.1
= control target key start
LH: loop header
LB: loop body
LE: loop exit
PB: predicated region body
PF: predicated region fallthrough
CT: control target
= control target key end

     0   :  { %s439_s0 = inlined_call_operand.hbm [shape: f32[16,256], index: 0, kind: input, shape index: {}]   ;;  %s440_s1 = inlined_call_operand.vmem [shape: f32[8,16], index: 1, kind: input, shape index: {}]   ;;  %s441_s2 = inlined_call_operand.vmem [shape: f32[8,1], index: 2, kind: input, shape index: {}]   ;;  %s442_s3 = inlined_call_operand.vmem [shape: f32[8,1], index: 3, kind: input, shape index: {}]   ;;  %s443_s4 = inlined_call_operand.<no memory space> [shape: f32[1,1], index: 4, kind: input, shape index: {}]   ;;  %s444_s5 = inlined_call_operand.hbm [shape: f32[4,256], index: 5, kind: output, shape index: {0}]   ;;  %s445_s6 = inlined_call_operand.hbm [shape: f32[1,256], index: 6, kind: output, shape index: {1}]  }
   0x1   :  { %v12_v0 = vstv %s443_s4 }
   0x2   :  { %13 = vst [vmem:[#allocation2] sm:$0x1] %v12_v0 }
   0x3   :  { %14 = vsyncpa [#allocation4], 0 }
   0x4   :  { %15 = vsyncpa [#allocation5], 0 }
   0x5   :  { %16 = vsyncpa [#allocation8], 0  ;;  %s334_s23 = smov [#allocation3]   ;;  %s262_s27 = scalar_lea.hbm %s439_s0, 512 }
   0x6   :  { %s22_s24 = sshll.u32 %s334_s23, 4  ;;  %p263_p0 = scmp.ne.s32.totalorder %s439_s0, %s262_s27  ;;  %s23_s24 = int_to_ptr.vmem [resolvable:$true] %s22_s24 }
   0x7   :  { %p266_p1 = scmp.lt.u32.totalorder %s262_s27, %s439_s0 }
   0x9   :  { %p268_p2 = pnand %p266_p1, %p263_p0 }
   0xb   :  { %271 = shalt.err (!%p268_p2)
}
   0xc   :  { %s272_s4 = scalar_lea.vmem %s23_s24, 512  ;;  %p277_p4 = scmp.lt.s32.totalorder %s23_s24, %s23_s24 }
   0xd   :  { %p273_p3 = scmp.ne.s32.totalorder %s23_s24, %s272_s4  ;;  %p278_p5 = scmp.lt.s32.totalorder %s272_s4, %s272_s4 }
   0xf   :  { %p279_p6 = por %p278_p5, %p277_p4 }
  0x11   :  { %p280_p7 = pnand %p279_p6, %p273_p3 }
  0x13   :  { %283 = shalt.err (!%p280_p7)
}
  0x14   :  { %s335_s8 = smov 256   ;;  %s336_s9 = smov 16  }
  0x15   :  { %28 = dma.hbm_to_vmem [thread:$0]  %s439_s0, 512, %s23_s24, [#allocation4], %s335_s8, %s335_s8, %s336_s9  }
  0x16   :  { %328 = dma.done.wait [#allocation4], 512  }
  0x17   :  { %329 = vsyncadd [#allocation4], 4294966784  ;;  %v337_v1 = vmov 0.0   ;;  %v338_v2 = vmov 0   ;;  %v392_v3 = vld [vmem:[#allocation3 + $0x8] sm:$0xff]  ;;  %v43_v4 = vld [vmem:[#allocation3 + $0x18] sm:$0xff]  ;;  %v172_v35 = vlaneseq }
  0x18   :  { %119 = vmatprep.mubr.f32.mxu0 %v337_v1  ;;  %252 = vset.pattern.permute.xlu0 %v338_v2  ;;  %v394_v5 = vld [vmem:[#allocation3] sm:$0xff]  ;;  %v240_v6 = vpack.c.bf16 %v43_v4, %v392_v3  ;;  %v42_v7 = vld [vmem:[#allocation3 + $0x10] sm:$0xff]  ;;  %v166_v10 = vld [vmem:[#allocation2] sm:$0x1]  ;;  %vm51_vm0 = vcmask 130048  }
  0x19   :  { %253 = vset.pattern.permute.xlu1 %v338_v2  ;;  %v45_v8 = vld [vmem:[%s441_s2] sm:$0xff]  ;;  %v242_v9 = vpack.c.bf16 %v42_v7, %v394_v5  ;;  %v173_v41 = vshrl.u32 %v172_v35, 7  ;;  %v339_v47 = vmov 1966171168   ;;  %vm409_vm1 = vcmp.lt.s32.totalorder %v172_v35, 256 }
  0x1a   :  { %48 = vperm.xlu0 %252, %v45_v8   ;;  %241 = vmatprep.subr.bf16.mxu0 %v240_v6  ;;  %v146_v11 = vld [vmem:[%s442_s3] sm:$0xff]  ;;  %v182_v48 = vunpack.c.l.s4 %v339_v47  ;;  %s341_s3 = smov [#allocation7]  }
  0x1b   :  { %169 = vperm.xlu1 %253, %v166_v10   ;;  %243 = vmatpush1.bf16.msra.mxu0 %v242_v9  ;;  %v44_v12 = vld [vmem:[%s440_s1] sm:$0xff]  ;;  %v174_v46 = vsub.s32 0, %v173_v41  ;;  %s340_s1 = smov [#allocation6]   ;;  %s224_s17 = sshll.u32 %s341_s3, 4  ;;  %s225_s17 = int_to_ptr.vmem [resolvable:$true] %s224_s17 }
  0x1c   :  { %v183_v55 = vunpack.c.0.s8 %v182_v48  ;;  %s214_s2 = sshll.u32 %s340_s1, 4  ;;  %s215_s2 = int_to_ptr.vmem [resolvable:$true] %s214_s2 }
  0x1d   :  { %s284_s18 = scalar_lea.vmem %s215_s2, 128  ;;  %p289_p9 = scmp.lt.s32.totalorder %s215_s2, %s215_s2 }
  0x1e   :  { %149 = vperm.xlu0 %252, %v146_v11   ;;  %237 = vmatmul.mubr.msk.f32.vlgmr.msra.gmra.mrb[0].mxu0 %vm51_vm0, %v44_v12  ;;  %v186_v60 = vsub.s32 %v183_v55, %v173_v41  ;;  %p285_p8 = scmp.ne.s32.totalorder %s215_s2, %s284_s18  ;;  %p290_p10 = scmp.lt.s32.totalorder %s284_s18, %s284_s18 }
  0x20   :  { %p291_p11 = por %p290_p10, %p289_p9 }
  0x22   :  { %p292_p12 = pnand %p291_p11, %p285_p8 }
  0x99   :  { %v49_v13 = vpop.permute.xlu0 %48 }
  0x9a   :  { %v170_v49 = vpop.permute.xlu1 %169 }
  0x9b   :  { %v175_v54 = vrot.slane %v170_v49, %v174_v46 }
  0x9d   :  { %v150_v36 = vpop.permute.xlu0 %149 }
  0xf1   :  { %v121_v14 = vpop.f32.mrb[0].mxu0 }
  0xf2   :  { %v122_v15 = vadd.f32 %v121_v14, %v49_v13  ;;  %v123_v16 = vpop.f32.mrb[1].mxu0 }
  0xf3   :  { %v124_v17 = vadd.f32 %v123_v16, %v49_v13 }
  0xf4   :  { %v238_v18 = vclamps-f32 %v122_v15, 30.0 }
  0xf5   :  { %v239_v19 = vclamps-f32 %v124_v17, 30.0 }
  0xf6   :  { %v130_v20 = vsub.f32 0.0, %v238_v18 }
  0xf7   :  { %v131_v21 = vsub.f32 0.0, %v239_v19 }
  0xf8   :  { %v132_v22 = vmul.f32 1.442695, %v130_v20 }
  0xf9   :  { %v134_v23 = vmul.f32 1.442695, %v131_v21 }
  0xfa   :  { %254 = vpow2.f32 %v132_v22 }
  0xfb   :  { %256 = vpow2.f32 %v134_v23 }
 0x104   :  { %v255_v24 = vpop.eup %254 }
 0x105   :  { %v257_v25 = vpop.eup %256  ;;  %v138_v26 = vmul.f32 %v255_v24, %v255_v24  ;;  %v136_v30 = vsub.f32 1.0, %v255_v24 }
 0x106   :  { %v139_v27 = vmul.f32 %v257_v25, %v257_v25  ;;  %v137_v32 = vsub.f32 1.0, %v257_v25 }
 0x107   :  { %v140_v28 = vadd.f32 1.0, %v138_v26 }
 0x108   :  { %v141_v29 = vadd.f32 1.0, %v139_v27 }
 0x109   :  { %258 = vrcp.f32 %v140_v28 }
 0x10a   :  { %260 = vrcp.f32 %v141_v29 }
 0x113   :  { %v259_v31 = vpop.eup %258 }
 0x114   :  { %v261_v33 = vpop.eup %260  ;;  %v144_v34 = vmul.f32 %v259_v31, %v136_v30 }
 0x115   :  { %v145_v37 = vmul.f32 %v261_v33, %v137_v32 }
 0x116   :  { %v152_v38 = vmul.f32 %v150_v36, %v144_v34 }
 0x117   :  { %v153_v39 = vmul.f32 %v150_v36, %v145_v37 }
 0x118   :  { %v154_v40 = vrot.slane %v152_v38, 4 }
 0x119   :  { %v160_v42 = vrot.slane %v153_v39, 4 }
 0x11a   :  { %v155_v43 = vadd.f32 %v154_v40, %v152_v38 }
 0x11b   :  { %v161_v44 = vadd.f32 %v160_v42, %v153_v39 }
 0x11c   :  { %v156_v45 = vrot.slane %v155_v43, 2 }
 0x11d   :  { %v162_v50 = vrot.slane %v161_v44, 2 }
 0x11e   :  { %v157_v51 = vadd.f32 %v156_v45, %v155_v43 }
 0x11f   :  { %v163_v52 = vadd.f32 %v162_v50, %v161_v44 }
 0x120   :  { %v158_v53 = vrot.slane %v157_v51, 1 }
 0x121   :  { %v164_v56 = vrot.slane %v163_v52, 1 }
 0x122   :  { %v159_v57 = vadd.f32 %v158_v53, %v157_v51 }
 0x123   :  { %v165_v58 = vadd.f32 %v164_v56, %v163_v52 }
 0x124   :  { %v176_v59 = vadd.f32 %v175_v54, %v159_v57 }
 0x125   :  { %v177_v61 = vadd.f32 %v175_v54, %v165_v58 }
 0x126   :  { %v201_v62 = vadd.f32 %v176_v59, %v394_v5 }
 0x127   :  { %v180_v63 = vcombine.low %v176_v59, %v177_v61  ;;  %v202_v0 = vadd.f32 %v177_v61, %v392_v3 }
 0x129   :  { %v187_v1 = vrot.slane %v180_v63, %v186_v60  ;;  %v205_v2 = vcombine.low %v201_v62, %v202_v0 }
 0x12b   :  { %207 = vst [vmem:[#allocation6] sm:$0xff] %v205_v2  ;;  %v194_v6 = vrot.slane %v187_v1, %v186_v60 }
 0x12c   :  { %295 = shalt.err (!%p292_p12)
}
 0x12d   :  { %s296_s21 = scalar_lea.hbm %s444_s5, 128 }
 0x12e   :  { %p297_p13 = scmp.ne.s32.totalorder %s444_s5, %s296_s21  ;;  %p300_p0 = scmp.lt.u32.totalorder %s296_s21, %s444_s5 }
 0x130   :  { %p302_p1 = pnand %p300_p0, %p297_p13 }
 0x132   :  { %305 = shalt.err (!%p302_p1)
}
 0x133   :  { %217 = dma.vmem_to_hbm [thread:$0]  %s215_s2, 128, %s444_s5, [#allocation5]   ;;  %200 = vst.msk [vmem:[#allocation7] sm:$0x3] %vm409_vm1, %v194_v6 }
 0x134   :  { %s306_s28 = scalar_lea.vmem %s225_s17, 32  ;;  %p311_p3 = scmp.lt.s32.totalorder %s225_s17, %s225_s17 }
 0x135   :  { %p307_p2 = scmp.ne.s32.totalorder %s225_s17, %s306_s28  ;;  %p312_p4 = scmp.lt.s32.totalorder %s306_s28, %s306_s28 }
 0x137   :  { %p313_p5 = por %p312_p4, %p311_p3 }
 0x139   :  { %p314_p6 = pnand %p313_p5, %p307_p2 }
 0x13b   :  { %317 = shalt.err (!%p314_p6)
}
 0x13c   :  { %s318_s7 = scalar_lea.hbm %s445_s6, 32 }
 0x13d   :  { %p319_p7 = scmp.ne.s32.totalorder %s445_s6, %s318_s7  ;;  %p322_p8 = scmp.lt.u32.totalorder %s318_s7, %s445_s6 }
 0x13f   :  { %p324_p9 = pnand %p322_p8, %p319_p7 }
 0x141   :  { %327 = shalt.err (!%p324_p9)
}
 0x142   :  { %227 = dma.vmem_to_hbm [thread:$0]  %s225_s17, 32, %s445_s6, [#allocation8]  }
 0x143   :  { %330 = dma.done.wait [#allocation5], 128  }
 0x144   :  { %331 = vsyncadd [#allocation5], 4294967168 }
 0x145   :  { %332 = dma.done.wait [#allocation8], 32  }
 0x146   :  { %333 = vsyncadd [#allocation8], 4294967264 }
 0x147   :  { %234 = vsyncpa [#allocation4], 1 }
 0x148   :  { %235 = vsyncpa [#allocation5], 1 }
 0x149   :  { %236 = vsyncpa [#allocation8], 1 }

</bundles_post_ra>
